<compile_context>
chip_gen: v6e
topology: v6e:2x2x1
jax: 0.10.0
libtpu: 0.0.40
codegen_flags: <defaults>
</compile_context>

<pallas_src>
import functools

import jax
import jax.numpy as jnp
from jax.experimental import pallas as pl
from jax.experimental.pallas import tpu as pltpu

_LANE = 128
_SUBLANE = 8


def _round_up(x, m):
    return pl.cdiv(x, m) * m


def _vmem_capacity_bytes():
    """Per-core VMEM capacity; conservative fallback if the query fails."""
    try:
        return int(pltpu.get_tpu_info().vmem_capacity_bytes)
    except Exception:
        return 64 << 20  # v7x per-TensorCore VMEM (the tightest generation)


# ---------------------------------------------------------------------------
# Kernels
# ---------------------------------------------------------------------------

def _mlp_fused_kernel(x_ref, w1_ref, b1_ref, w2_ref, b2_ref, o_ref):
    """Whole MLP for one batch tile; both weight matrices VMEM-resident."""
    # In-kernel cast of x to the matmul dtype (hidden under MXU compute).
    h = jnp.dot(x_ref[...].astype(w1_ref.dtype), w1_ref[...],
                preferred_element_type=jnp.float32)
    h = jnp.maximum(h + b1_ref[...], 0.0)                    # f32 bias + ReLU
    y = jnp.dot(h.astype(w2_ref.dtype), w2_ref[...],
                preferred_element_type=jnp.float32)
    o_ref[...] = (y + b2_ref[...]).astype(o_ref.dtype)


def _mlp_dp_tiled_kernel(x_ref, w1_ref, b1_ref, w2_ref, b2_ref, o_ref, h_ref):
    """Fallback when w2 is too big to keep resident: grid = (N tiles, Dp tiles).

    The hidden activation of batch tile i is computed once (inner axis j == 0)
    into a VMEM scratch and reused for every Dp tile j.
    """
    @pl.when(pl.program_id(1) == 0)
    def _():
        h = jnp.dot(x_ref[...].astype(w1_ref.dtype), w1_ref[...],
                    preferred_element_type=jnp.float32)
        h_ref[...] = jnp.maximum(h + b1_ref[...], 0.0)
    y = jnp.dot(h_ref[...].astype(w2_ref.dtype), w2_ref[...],
                preferred_element_type=jnp.float32)
    o_ref[...] = (y + b2_ref[...]).astype(o_ref.dtype)


# ---------------------------------------------------------------------------
# Parameter preparation (one-time, amortized outside the forward pass)
# ---------------------------------------------------------------------------

def prepare_params(w1, b1, w2, b2, *, compute_dtype=jnp.bfloat16):
    """Prepare PyTorch-layout parameters for the Pallas kernel.

    w1: (H, D_in)  b1: (H,)     w2: (D_out, H)  b2: (D_out,)
    Returns weights transposed for `x @ W` with H and D_out zero-padded to
    128-lane multiples.  Padding is numerically exact: the padded hidden lanes
    are ReLU(0 + 0) = 0 and the padded w2 rows/cols and b2 lanes are zero.
    """
    H, _ = w1.shape
    D_out = w2.shape[0]
    Hp = max(_LANE, _round_up(H, _LANE))
    Dp = max(_LANE, _round_up(D_out, _LANE))

    wd = compute_dtype if compute_dtype is not None else w1.dtype
    D_in = w1.shape[1]
    w1_t = jnp.zeros((D_in, Hp), wd).at[:, :H].set(jnp.transpose(w1).astype(wd))
    b1_r = jnp.zeros((1, Hp), jnp.float32).at[0, :H].set(b1.astype(jnp.float32))
    w2_t = jnp.zeros((Hp, Dp), wd).at[:H, :D_out].set(jnp.transpose(w2).astype(wd))
    b2_r = jnp.zeros((1, Dp), jnp.float32).at[0, :D_out].set(b2.astype(jnp.float32))
    return (w1_t, b1_r, w2_t, b2_r), D_out


# ---------------------------------------------------------------------------
# Forward pass
# ---------------------------------------------------------------------------

@functools.partial(jax.jit,
                   static_argnames=("d_out", "tile_n", "tile_dp", "out_dtype"))
def two_layer_net_forward(x, params, *, d_out, tile_n=1024, tile_dp=None,
                          out_dtype=None):
    """x: (N, D_in) -> (N, d_out) using prepared params."""
    w1_t, b1_r, w2_t, b2_r = params
    N, D_in = x.shape
    Hp, Dp = w2_t.shape
    out_dtype = x.dtype if out_dtype is None else out_dtype

    x_bytes = jnp.dtype(x.dtype).itemsize
    w_bytes = jnp.dtype(w1_t.dtype).itemsize
    o_bytes = jnp.dtype(out_dtype).itemsize

    # Generation-aware VMEM budget (~70% of per-core capacity).
    budget = int(0.7 * _vmem_capacity_bytes())

    # Choose Dp tile: keep both weight matrices resident when they fit in
    # ~45% of the budget; otherwise tile w2/b2/out over Dp.
    w1_res = D_in * Hp * w_bytes
    if tile_dp is None:
        tile_dp = Dp
        if w1_res + Hp * Dp * w_bytes > 0.45 * budget:
            tile_dp = _LANE
            for cand in range(Dp, _LANE - 1, -_LANE):
                if Dp % cand == 0 and w1_res + 2 * Hp * cand * w_bytes <= 0.45 * budget:
                    tile_dp = cand
                    break
    dp_tiled = tile_dp < Dp
    w_res = w1_res + (2 if dp_tiled else 1) * Hp * tile_dp * w_bytes

    # Choose the batch tile: multiple of 8 sublanes, no over-padding of tiny
    # batches, >=2 grid steps when N allows (v7x megacore), and fit the budget.
    tile_n = max(_SUBLANE, min(tile_n, _round_up(N, _SUBLANE)))
    tile_n = _round_up(tile_n, _SUBLANE)
    if N > 2 * _SUBLANE:
        tile_n = min(tile_n, _round_up(pl.cdiv(N, 2), _SUBLANE))
    # Double-buffered x/out tiles + f32 hidden/output intermediates per row.
    per_row = 2 * D_in * x_bytes + 2 * tile_dp * o_bytes + 4 * Hp + 4 * tile_dp
    avail = max(budget - w_res - (4 << 20), 2 << 20)
    tile_n = max(_SUBLANE, min(tile_n, (avail // per_row) // _SUBLANE * _SUBLANE))

    grid_n = pl.cdiv(N, tile_n)      # ragged last block clipped by Pallas
    grid_dp = pl.cdiv(Dp, tile_dp)

    vmem_est = w_res + tile_n * per_row + (4 << 20)
    vmem_limit = int(min(max(vmem_est, 16 << 20), budget))

    cost = pl.CostEstimate(
        flops=2 * N * (D_in * Hp + Hp * Dp),
        transcendentals=0,
        bytes_accessed=(N * D_in * x_bytes
                        + (D_in * Hp + Hp * Dp) * w_bytes
                        + N * Dp * o_bytes),
    )

    resident = pl.Buffered(1)   # constant index_map -> single VMEM buffer

    if not dp_tiled:
        y = pl.pallas_call(
            _mlp_fused_kernel,
            out_shape=jax.ShapeDtypeStruct((N, Dp), out_dtype),
            grid=(grid_n,),
            in_specs=[
                pl.BlockSpec((tile_n, D_in), lambda i: (i, 0)),       # x tile
                pl.BlockSpec((D_in, Hp), lambda i: (0, 0), pipeline_mode=resident),
                pl.BlockSpec((1, Hp), lambda i: (0, 0), pipeline_mode=resident),
                pl.BlockSpec((Hp, Dp), lambda i: (0, 0), pipeline_mode=resident),
                pl.BlockSpec((1, Dp), lambda i: (0, 0), pipeline_mode=resident),
            ],
            out_specs=pl.BlockSpec((tile_n, Dp), lambda i: (i, 0)),
            compiler_params=pltpu.CompilerParams(
                dimension_semantics=("parallel",),
                vmem_limit_bytes=vmem_limit,
            ),
            cost_estimate=cost,
        )(x, w1_t, b1_r, w2_t, b2_r)
    else:
        y = pl.pallas_call(
            _mlp_dp_tiled_kernel,
            out_shape=jax.ShapeDtypeStruct((N, Dp), out_dtype),
            grid=(grid_n, grid_dp),
            in_specs=[
                pl.BlockSpec((tile_n, D_in), lambda i, j: (i, 0)),
                pl.BlockSpec((D_in, Hp), lambda i, j: (0, 0), pipeline_mode=resident),
                pl.BlockSpec((1, Hp), lambda i, j: (0, 0), pipeline_mode=resident),
                pl.BlockSpec((Hp, tile_dp), lambda i, j: (0, j)),     # w2 slice
                pl.BlockSpec((1, tile_dp), lambda i, j: (0, j)),      # b2 slice
            ],
            out_specs=pl.BlockSpec((tile_n, tile_dp), lambda i, j: (i, j)),
            scratch_shapes=[pltpu.VMEM((tile_n, Hp), jnp.float32)],   # cached h
            compiler_params=pltpu.CompilerParams(
                dimension_semantics=("parallel", "arbitrary"),
                vmem_limit_bytes=vmem_limit,
            ),
            cost_estimate=cost,
        )(x, w1_t, b1_r, w2_t, b2_r)

    # Strip lane padding of D_out only if it exists (no extra pass otherwise).
    return y if Dp == d_out else y[:, :d_out]


def two_layer_net(x, w1, b1, w2, b2, *, compute_dtype=jnp.bfloat16,
                  tile_n=1024, tile_dp=None, out_dtype=None):
    """Convenience wrapper taking PyTorch-layout parameters.

    For repeated calls, hoist prepare_params() out and call
    two_layer_net_forward() directly to avoid re-transposing weights.
    """
    params, d_out = prepare_params(w1, b1, w2, b2, compute_dtype=compute_dtype)
    return two_layer_net_forward(x, params, d_out=d_out, tile_n=tile_n,
                                 tile_dp=tile_dp, out_dtype=out_dtype)


if __name__ == "__main__":
    key = jax.random.PRNGKey(0)

    # --- Case 1: TwoLayerNet(D_in=64, H=32, D_out=16), batch N=8 ------------
    N, D_in, H, D_out = 8, 64, 32, 16
    kx, kw1, kb1, kw2, kb2 = jax.random.split(key, 5)
    x = jax.random.normal(kx, (N, D_in), dtype=jnp.float32)
    w1 = jax.random.normal(kw1, (H, D_in), dtype=jnp.float32) * 0.1
    b1 = jax.random.normal(kb1, (H,), dtype=jnp.float32) * 0.1
    w2 = jax.random.normal(kw2, (D_out, H), dtype=jnp.float32) * 0.1
    b2 = jax.random.normal(kb2, (D_out,), dtype=jnp.float32) * 0.1

    # Reference in plain JAX (same math as the PyTorch forward).
    y_ref = jnp.maximum(x @ w1.T + b1, 0.0) @ w2.T + b2

    # f32 compute path (tight tolerance).
    y_f32 = two_layer_net(x, w1, b1, w2, b2, compute_dtype=jnp.float32)
    jax.block_until_ready(y_f32)
    assert y_f32.shape == (N, D_out)
    assert jnp.allclose(y_f32, y_ref, atol=1e-5, rtol=1e-5)

    # Default path: bf16 matmul operands with f32 accumulation (looser tol).
    y_bf16 = two_layer_net(x, w1, b1, w2, b2)
    jax.block_until_ready(y_bf16)
    assert y_bf16.shape == (N, D_out)
    assert jnp.allclose(y_bf16, y_ref, atol=3e-2, rtol=3e-2)

    # --- Case 2: exercise the Dp-tiled fallback + ragged batch block --------
    N2, D_in2, H2, D_out2 = 24, 64, 32, 256
    k2 = jax.random.split(jax.random.PRNGKey(0), 5)
    x2 = jax.random.normal(k2[0], (N2, D_in2), dtype=jnp.float32)
    w1b = jax.random.normal(k2[1], (H2, D_in2), dtype=jnp.float32) * 0.1
    b1b = jax.random.normal(k2[2], (H2,), dtype=jnp.float32) * 0.1
    w2b = jax.random.normal(k2[3], (D_out2, H2), dtype=jnp.float32) * 0.1
    b2b = jax.random.normal(k2[4], (D_out2,), dtype=jnp.float32) * 0.1

    y2_ref = jnp.maximum(x2 @ w1b.T + b1b, 0.0) @ w2b.T + b2b
    params2, d_out2 = prepare_params(w1b, b1b, w2b, b2b,
                                     compute_dtype=jnp.float32)
    y2 = two_layer_net_forward(x2, params2, d_out=d_out2,
                               tile_n=16, tile_dp=128)   # force Dp tiling
    jax.block_until_ready(y2)
    assert y2.shape == (N2, D_out2)
    assert jnp.allclose(y2, y2_ref, atol=1e-5, rtol=1e-5)

    print("KERNEL_OK")
</pallas_src>

<mosaic_0001>
module attributes {stable_mosaic.version = 11 : i64} {
  func.func @_mlp_fused_kernel(%arg0: i32, %arg1: memref<8x64xf32, #tpu.memory_space<vmem>>, %arg2: memref<64x128xf32, #tpu.memory_space<vmem>>, %arg3: memref<1x128xf32, #tpu.memory_space<vmem>>, %arg4: memref<128x128xf32, #tpu.memory_space<vmem>>, %arg5: memref<1x128xf32, #tpu.memory_space<vmem>>, %arg6: memref<8x128xf32, #tpu.memory_space<vmem>>) attributes {dimension_semantics = [#tpu.dimension_semantics<parallel>], iteration_bounds = array<i64: 1>, scalar_prefetch = 0 : i64, scratch_operands = 0 : i64, tpu.core_type = #tpu.core_type<tc>, window_params = [{transform_indices = @transform_0, window_bounds = array<i64: 8, 64>}, {pipeline_mode = #tpu.pipeline_mode<synchronous>, transform_indices = @transform_1, window_bounds = array<i64: 64, 128>}, {pipeline_mode = #tpu.pipeline_mode<synchronous>, transform_indices = @transform_2, window_bounds = array<i64: 1, 128>}, {pipeline_mode = #tpu.pipeline_mode<synchronous>, transform_indices = @transform_3, window_bounds = array<i64: 128, 128>}, {pipeline_mode = #tpu.pipeline_mode<synchronous>, transform_indices = @transform_4, window_bounds = array<i64: 1, 128>}, {transform_indices = @transform_5, window_bounds = array<i64: 8, 128>}]} {
    %c0 = arith.constant 0 : index
    %c0_0 = arith.constant 0 : index
    %0 = vector.load %arg1[%c0, %c0_0] : memref<8x64xf32, #tpu.memory_space<vmem>>, vector<8x64xf32>
    %c0_1 = arith.constant 0 : index
    %c0_2 = arith.constant 0 : index
    %1 = vector.load %arg2[%c0_1, %c0_2] : memref<64x128xf32, #tpu.memory_space<vmem>>, vector<64x128xf32>
    %cst = arith.constant dense<0.000000e+00> : vector<8x128xf32>
    %2 = tpu.matmul %0, %1, %cst {dimension_numbers = #tpu.dot_dimension_numbers<[1], [0], [0], [1], [0, 0, 1, 1], [], []>} : vector<8x64xf32>, vector<64x128xf32>, vector<8x128xf32> -> vector<8x128xf32>
    %c0_3 = arith.constant 0 : index
    %c0_4 = arith.constant 0 : index
    %3 = vector.load %arg3[%c0_3, %c0_4] : memref<1x128xf32, #tpu.memory_space<vmem>>, vector<1x128xf32>
    %4 = vector.broadcast %3 : vector<1x128xf32> to vector<8x128xf32>
    %5 = arith.addf %2, %4 : vector<8x128xf32>
    %cst_5 = arith.constant 0.000000e+00 : f32
    %6 = vector.broadcast %cst_5 : f32 to vector<8x128xf32>
    %7 = arith.maximumf %5, %6 : vector<8x128xf32>
    %c0_6 = arith.constant 0 : index
    %c0_7 = arith.constant 0 : index
    %8 = vector.load %arg4[%c0_6, %c0_7] : memref<128x128xf32, #tpu.memory_space<vmem>>, vector<128x128xf32>
    %cst_8 = arith.constant dense<0.000000e+00> : vector<8x128xf32>
    %9 = tpu.matmul %7, %8, %cst_8 {dimension_numbers = #tpu.dot_dimension_numbers<[1], [0], [0], [1], [0, 0, 1, 1], [], []>} : vector<8x128xf32>, vector<128x128xf32>, vector<8x128xf32> -> vector<8x128xf32>
    %c0_9 = arith.constant 0 : index
    %c0_10 = arith.constant 0 : index
    %10 = vector.load %arg5[%c0_9, %c0_10] : memref<1x128xf32, #tpu.memory_space<vmem>>, vector<1x128xf32>
    %11 = vector.broadcast %10 : vector<1x128xf32> to vector<8x128xf32>
    %12 = arith.addf %9, %11 : vector<8x128xf32>
    %c0_11 = arith.constant 0 : index
    %c0_12 = arith.constant 0 : index
    %13 = vector.load %arg6[%c0_11, %c0_12] : memref<8x128xf32, #tpu.memory_space<vmem>>, vector<8x128xf32>
    tpu.vector_store %arg6[%c0_11, %c0_12], %12 {strides = array<i32>} : memref<8x128xf32, #tpu.memory_space<vmem>>, vector<8x128xf32>,
    return
  }
  func.func @transform_0(%arg0: i32) -> (i32, i32) {
    %c0_i32 = arith.constant 0 : i32
    %c0_i32_0 = arith.constant 0 : i32
    return %arg0, %c0_i32 : i32, i32
  }
  func.func @transform_1(%arg0: i32) -> (i32, i32) {
    %c0_i32 = arith.constant 0 : i32
    %c0_i32_0 = arith.constant 0 : i32
    %c0_i32_1 = arith.constant 0 : i32
    return %c0_i32, %c0_i32_0 : i32, i32
  }
  func.func @transform_2(%arg0: i32) -> (i32, i32) {
    %c0_i32 = arith.constant 0 : i32
    %c0_i32_0 = arith.constant 0 : i32
    %c0_i32_1 = arith.constant 0 : i32
    return %c0_i32, %c0_i32_0 : i32, i32
  }
  func.func @transform_3(%arg0: i32) -> (i32, i32) {
    %c0_i32 = arith.constant 0 : i32
    %c0_i32_0 = arith.constant 0 : i32
    %c0_i32_1 = arith.constant 0 : i32
    return %c0_i32, %c0_i32_0 : i32, i32
  }
  func.func @transform_4(%arg0: i32) -> (i32, i32) {
    %c0_i32 = arith.constant 0 : i32
    %c0_i32_0 = arith.constant 0 : i32
    %c0_i32_1 = arith.constant 0 : i32
    return %c0_i32, %c0_i32_0 : i32, i32
  }
  func.func @transform_5(%arg0: i32) -> (i32, i32) {
    %c0_i32 = arith.constant 0 : i32
    %c0_i32_0 = arith.constant 0 : i32
    return %arg0, %c0_i32 : i32, i32
  }
}

</mosaic_0001>

<bundles_post_ra>
// kernel: two_layer_net_forward.1
= control target key start
LH: loop header
LB: loop body
LE: loop exit
PB: predicated region body
PF: predicated region fallthrough
CT: control target
= control target key end

     0   :  { %10 = vsyncpa [#allocation3], 0  ;;  %s520_s0 = inlined_call_operand.hbm [shape: f32[8,64], index: 0, kind: input, shape index: {}]   ;;  %s521_s1 = inlined_call_operand.hbm [shape: f32[64,128], index: 1, kind: input, shape index: {}]   ;;  %s522_s2 = inlined_call_operand.vmem [shape: f32[1,128], index: 2, kind: input, shape index: {}]   ;;  %s523_s3 = inlined_call_operand.hbm [shape: f32[128,128], index: 3, kind: input, shape index: {}]   ;;  %s524_s4 = inlined_call_operand.vmem [shape: f32[1,128], index: 4, kind: input, shape index: {}]   ;;  %s525_s5 = inlined_call_operand.hbm [shape: f32[8,128], index: 5, kind: output, shape index: {}]  }
   0x1   :  { %11 = vsyncpa [#allocation6], 0 }
   0x2   :  { %12 = vsyncpa [#allocation4], 0  ;;  %s438_s18 = smov [#allocation5]  }
   0x3   :  { %s28_s19 = sshll.u32 %s438_s18, 4  ;;  %s29_s19 = int_to_ptr.vmem [resolvable:$true] %s28_s19 }
   0x4   :  { %s360_s20 = scalar_lea.vmem %s29_s19, 1024  ;;  %p365_p1 = scmp.lt.s32.totalorder %s29_s19, %s29_s19 }
   0x5   :  { %p361_p0 = scmp.ne.s32.totalorder %s29_s19, %s360_s20  ;;  %p366_p2 = scmp.lt.s32.totalorder %s360_s20, %s360_s20 }
   0x7   :  { %p367_p3 = por %p366_p2, %p365_p1 }
   0x9   :  { %p368_p4 = pnand %p367_p3, %p361_p0 }
   0xb   :  { %371 = shalt.err (!%p368_p4)
}
   0xc   :  { %s439_s21 = smov 128   ;;  %s440_s22 = smov 8  }
   0xd   :  { %34 = dma.hbm_to_vmem [thread:$0]  %s521_s1, 1024, %s29_s19, [#allocation6], %s439_s21, %s439_s21, %s440_s22  }
   0xe   :  { %s441_s25 = smov [#allocation2]   ;;  %s442_s27 = smov [#allocation7]  }
   0xf   :  { %s19_s26 = sshll.u32 %s441_s25, 4  ;;  %s42_s28 = sshll.u32 %s442_s27, 4  ;;  %s20_s26 = int_to_ptr.vmem [resolvable:$true] %s19_s26  ;;  %s43_s28 = int_to_ptr.vmem [resolvable:$true] %s42_s28 }
  0x10   :  { %s380_s29 = scalar_lea.vmem %s20_s26, 128  ;;  %p385_p6 = scmp.lt.s32.totalorder %s20_s26, %s20_s26 }
  0x11   :  { %p381_p5 = scmp.ne.s32.totalorder %s20_s26, %s380_s29  ;;  %p386_p7 = scmp.lt.s32.totalorder %s380_s29, %s380_s29 }
  0x13   :  { %p387_p8 = por %p386_p7, %p385_p6 }
  0x15   :  { %p388_p9 = pnand %p387_p8, %p381_p5 }
  0x17   :  { %391 = shalt.err (!%p388_p9)
}
  0x18   :  { %22 = dma.hbm_to_vmem [thread:$0]  %s520_s0, 128, %s20_s26, [#allocation3]  }
  0x19   :  { %s400_s7 = scalar_lea.vmem %s43_s28, 2048  ;;  %p405_p11 = scmp.lt.s32.totalorder %s43_s28, %s43_s28 }
  0x1a   :  { %p401_p10 = scmp.ne.s32.totalorder %s43_s28, %s400_s7  ;;  %p406_p12 = scmp.lt.s32.totalorder %s400_s7, %s400_s7 }
  0x1c   :  { %p407_p13 = por %p406_p12, %p405_p11 }
  0x1e   :  { %p408_p0 = pnand %p407_p13, %p401_p10 }
  0x20   :  { %411 = shalt.err (!%p408_p0)
}
  0x21   :  { %48 = dma.hbm_to_vmem [thread:$0]  %s523_s3, 2048, %s43_s28, [#allocation6], %s439_s21, %s439_s21, %s440_s22  }
  0x22   :  { %432 = dma.done.wait [#allocation3], 128  }
  0x23   :  { %433 = vsyncadd [#allocation3], 4294967168 }
  0x24   :  { %434 = dma.done.wait [#allocation6], 3072  }
  0x25   :  { %435 = vsyncadd [#allocation6], 4294964224  ;;  %v443_v0 = vmov 0.0   ;;  %vm444_vm0 = vmmov 0   ;;  %v68_v1 = vld [vmem:[#allocation5 + $0x38] sm:$0xff]  ;;  %v67_v2 = vld [vmem:[#allocation5 + $0x30] sm:$0xff] }
  0x26   :  { %290 = vmatprep.subr.mxu0 %v443_v0  ;;  %306 = vmatprep.mubr.msk.f32.mxu0 %vm444_vm0, %v443_v0  ;;  %v66_v3 = vld [vmem:[#allocation5 + $0x28] sm:$0xff]  ;;  %v166_v4 = vld [vmem:[#allocation7 + $0x78] sm:$0xff]  ;;  %v165_v5 = vld [vmem:[#allocation7 + $0x70] sm:$0xff]  ;;  %vm76_vm1 = vcmask 523264   ;;  %s445_s11 = smov [#allocation8]  }
  0x27   :  { %309 = vmatprep.subr.mxu1 %v443_v0  ;;  %341 = vmatprep.mubr.msk.f32.mxu1 %vm444_vm0, %v443_v0  ;;  %v65_v6 = vld [vmem:[#allocation5 + $0x20] sm:$0xff]  ;;  %v164_v7 = vld [vmem:[#allocation7 + $0x68] sm:$0xff]  ;;  %v64_v8 = vld [vmem:[#allocation5 + $0x18] sm:$0xff]  ;;  %s251_s12 = sshll.u32 %s445_s11, 4  ;;  %s252_s12 = int_to_ptr.vmem [resolvable:$true] %s251_s12 }
  0x28   :  { %291 = vmatpush3.msra.mxu0 %v68_v1  ;;  %310 = vmatpush3.msra.mxu1 %v166_v4  ;;  %v163_v9 = vld [vmem:[#allocation7 + $0x60] sm:$0xff]  ;;  %v63_v10 = vld [vmem:[#allocation5 + $0x10] sm:$0xff]  ;;  %v162_v11 = vld [vmem:[#allocation7 + $0x58] sm:$0xff]  ;;  %s412_s13 = scalar_lea.vmem %s252_s12, 128  ;;  %p417_p2 = scmp.lt.s32.totalorder %s252_s12, %s252_s12 }
  0x29   :  { %292 = vmatprep.subr.mxu0 %v443_v0  ;;  %311 = vmatprep.subr.mxu1 %v443_v0  ;;  %v62_v12 = vld [vmem:[#allocation5 + $0x8] sm:$0xff]  ;;  %v161_v13 = vld [vmem:[#allocation7 + $0x50] sm:$0xff]  ;;  %v61_v14 = vld [vmem:[#allocation5] sm:$0xff]  ;;  %p413_p1 = scmp.ne.s32.totalorder %s252_s12, %s412_s13  ;;  %p418_p3 = scmp.lt.s32.totalorder %s412_s13, %s412_s13 }
  0x2a   :  { %293 = vmatpush3.msra.mxu0 %v67_v2  ;;  %312 = vmatpush3.msra.mxu1 %v165_v5  ;;  %v60_v15 = vld [vmem:[#allocation2] sm:$0xff]  ;;  %v160_v16 = vld [vmem:[#allocation7 + $0x48] sm:$0xff]  ;;  %v159_v17 = vld [vmem:[#allocation7 + $0x40] sm:$0xff] }
  0x2b   :  { %294 = vmatprep.subr.mxu0 %v443_v0  ;;  %313 = vmatprep.subr.mxu1 %v443_v0  ;;  %v158_v18 = vld [vmem:[#allocation7 + $0x38] sm:$0xff]  ;;  %v157_v19 = vld [vmem:[#allocation7 + $0x30] sm:$0xff]  ;;  %v156_v20 = vld [vmem:[#allocation7 + $0x28] sm:$0xff]  ;;  %p419_p4 = por %p418_p3, %p417_p2 }
  0x2c   :  { %295 = vmatpush3.msra.mxu0 %v66_v3  ;;  %314 = vmatpush3.msra.mxu1 %v164_v7  ;;  %v155_v21 = vld [vmem:[#allocation7 + $0x20] sm:$0xff]  ;;  %v154_v22 = vld [vmem:[#allocation7 + $0x18] sm:$0xff]  ;;  %v153_v23 = vld [vmem:[#allocation7 + $0x10] sm:$0xff] }
  0x2d   :  { %296 = vmatprep.subr.mxu0 %v443_v0  ;;  %315 = vmatprep.subr.mxu1 %v443_v0  ;;  %v152_v24 = vld [vmem:[#allocation7 + $0x8] sm:$0xff]  ;;  %v151_v25 = vld [vmem:[#allocation7] sm:$0xff]  ;;  %v261_v26 = vld [vmem:[%s522_s2] ss:$0 sm:$0xff]  ;;  %p420_p5 = pnand %p419_p4, %p413_p1 }
  0x2e   :  { %297 = vmatpush3.msra.mxu0 %v65_v6  ;;  %316 = vmatpush3.msra.mxu1 %v163_v9  ;;  %v263_v31 = vld [vmem:[%s524_s4] ss:$0 sm:$0xff] }
  0x2f   :  { %298 = vmatprep.subr.mxu0 %v443_v0  ;;  %317 = vmatprep.subr.mxu1 %v443_v0 }
  0x30   :  { %299 = vmatpush3.msra.mxu0 %v64_v8  ;;  %318 = vmatpush3.msra.mxu1 %v162_v11 }
  0x31   :  { %300 = vmatprep.subr.mxu0 %v443_v0  ;;  %319 = vmatprep.subr.mxu1 %v443_v0 }
  0x32   :  { %301 = vmatpush3.msra.mxu0 %v63_v10  ;;  %320 = vmatpush3.msra.mxu1 %v161_v13 }
  0x33   :  { %302 = vmatprep.subr.mxu0 %v443_v0  ;;  %321 = vmatprep.subr.mxu1 %v443_v0 }
  0x34   :  { %303 = vmatpush3.msra.mxu0 %v62_v12  ;;  %322 = vmatpush3.msra.mxu1 %v160_v16 }
  0x35   :  { %304 = vmatprep.subr.mxu0 %v443_v0  ;;  %323 = vmatprep.subr.mxu1 %v443_v0 }
  0x36   :  { %305 = vmatpush3.msra.mxu0 %v61_v14  ;;  %324 = vmatpush3.msra.mxu1 %v159_v17 }
  0x37   :  { %307 = vmatmul.mubr.msk.f32.vlgmr.msra.gmra.mxu0 %vm76_vm1, %v60_v15  ;;  %325 = vmatprep.subr.mxu1 %v443_v0 }
  0x38   :  { %326 = vmatpush3.msra.mxu1 %v158_v18 }
  0x39   :  { %327 = vmatprep.subr.mxu1 %v443_v0 }
  0x3a   :  { %328 = vmatpush3.msra.mxu1 %v157_v19 }
  0x3b   :  { %329 = vmatprep.subr.mxu1 %v443_v0 }
  0x3c   :  { %330 = vmatpush3.msra.mxu1 %v156_v20 }
  0x3d   :  { %331 = vmatprep.subr.mxu1 %v443_v0 }
  0x3e   :  { %332 = vmatpush3.msra.mxu1 %v155_v21 }
  0x3f   :  { %333 = vmatprep.subr.mxu1 %v443_v0 }
  0x40   :  { %334 = vmatpush3.msra.mxu1 %v154_v22 }
  0x41   :  { %335 = vmatprep.subr.mxu1 %v443_v0 }
  0x42   :  { %336 = vmatpush3.msra.mxu1 %v153_v23 }
  0x43   :  { %337 = vmatprep.subr.mxu1 %v443_v0 }
  0x44   :  { %338 = vmatpush3.msra.mxu1 %v152_v24 }
  0x45   :  { %339 = vmatprep.subr.mxu1 %v443_v0 }
  0x46   :  { %340 = vmatpush3.msra.mxu1 %v151_v25 }
  0xf7   :  { %v146_v27 = vpop.f32.mrf.mxu0 }
  0xf8   :  { %v147_v28 = vadd.f32 %v261_v26, %v146_v27 }
  0xf9   :  { %v308_v29 = vpop.f32.mrf.mxu0 }
  0xfa   :  { %v150_v30 = vmax.f32 %v147_v28, 0.0 }
  0xfc   :  { %342 = vmatmul.mubr.f32.vlgmr.msra.gmra.mxu1 %v150_v30 }
 0x1bc   :  { %v240_v32 = vpop.f32.mrf.mxu1 }
 0x1bd   :  { %v241_v33 = vadd.f32 %v263_v31, %v240_v32 }
 0x1be   :  { %v343_v34 = vpop.f32.mrf.mxu1 }
 0x1bf   :  { %244 = vst [vmem:[#allocation8] sm:$0xff] %v241_v33 }
 0x1c0   :  { %423 = shalt.err (!%p420_p5)
}
 0x1c1   :  { %254 = dma.vmem_to_hbm [thread:$0]  %s252_s12, 128, %s525_s5, [#allocation4]  }
 0x1c2   :  { %436 = dma.done.wait [#allocation4], 128  }
 0x1c3   :  { %437 = vsyncadd [#allocation4], 4294967168 }
 0x1c4   :  { %258 = vsyncpa [#allocation3], 1 }
 0x1c5   :  { %259 = vsyncpa [#allocation6], 1 }
 0x1c6   :  { %260 = vsyncpa [#allocation4], 1 }

</bundles_post_ra>
